<compile_context>
chip_gen: v6e
topology: v6e:2x2x1
jax: 0.10.0
libtpu: 0.0.40
codegen_flags: <defaults>
</compile_context>

<pallas_src>
import functools

import jax
import jax.numpy as jnp
from jax.experimental import pallas as pl
from jax.experimental.pallas import tpu as pltpu

_EPS = 1e-8
_MAX_TILE_M = 65536  # lane cap: bounds a single block's VMEM footprint


def _round_up(v, mult):
    return ((v + mult - 1) // mult) * mult


def _vmem_budget_bytes():
    """~70% of this chip's physical VMEM (portable v5e/v6e/v7x), clamped."""
    cap = 64 * 1024 * 1024  # conservative default = v7x physical VMEM
    try:
        cap = int(getattr(pltpu.get_tpu_info(), "vmem_capacity_bytes", cap))
    except Exception:
        pass
    return max(32 * 1024 * 1024, min(int(cap * 0.7), 96 * 1024 * 1024))


def _pick_tile_m(n_rows, out_w, dtype, vmem_limit):
    """Largest 128-multiple lane tile whose pipeline buffers fit the budget."""
    itemsize = jnp.dtype(dtype).itemsize
    # Per lane of tile width: 2x input + 2x output double buffers plus the
    # 8-sublane-padded f32 std accumulator.
    per_lane = 4 * n_rows * itemsize + 8 * 4
    usable = (2 * vmem_limit) // 3            # headroom for Mosaic internals
    max_fit = max(128, usable // per_lane)
    tile = min(max_fit, _round_up(out_w, 128), _MAX_TILE_M)
    return int(max(128, 128 * (tile // 128)))


def _batch_var(xf, n):
    """Per-lane two-pass variance over the batch (sublane) axis -> (1, T)."""
    if n <= 8:
        # Tiny N: rows occupy only N of 8 f32 sublanes; unrolled row adds
        # avoid a cross-sublane XLU reduce.  Still mean-then-square (stable).
        rows = [xf[k:k + 1, :] for k in range(n)]
        tot = rows[0]
        for r in rows[1:]:
            tot = tot + r
        mu = tot * (1.0 / n)
        sq = (rows[0] - mu) ** 2
        for r in rows[1:]:
            sq = sq + (r - mu) ** 2
        return sq * (1.0 / n)
    mu = jnp.mean(xf, axis=0, keepdims=True)
    return jnp.mean((xf - mu) ** 2, axis=0, keepdims=True)


def _mbstd_kernel(x_ref, o_ref, acc_ref, *, n, m, inv_m, tile_m,
                  nm_full, has_boundary, n_blocks):
    """One grid step = one tile_m-wide lane tile of the flat output.

    i <  nm_full            : passthrough copy + per-lane std accumulate.
    i == nm_full (boundary) : masked accumulate, finish the scalar, write the
                              mixed x / scalar block (when m % tile_m != 0).
    i == nm_full (aligned)  : finish the scalar, then fall through to tail.
    i >= tail_start         : broadcast the parked scalar into the extra
                              channel region.
    """
    i = pl.program_id(0)

    @pl.when(i == 0)
    def _init():
        acc_ref[...] = jnp.zeros_like(acc_ref)

    if nm_full > 0:
        @pl.when(i < nm_full)
        def _full_tile():
            x = x_ref[...]
            o_ref[...] = x.astype(o_ref.dtype)               # lane-dense copy
            xf = x.astype(jnp.float32)
            acc_ref[...] += jnp.sqrt(_batch_var(xf, n) + _EPS)

    if has_boundary:
        rem = m - nm_full * tile_m                           # static, in (0, tile_m)

        @pl.when(i == nm_full)
        def _boundary_tile():
            x = x_ref[...]
            xf = x.astype(jnp.float32)
            lane = jax.lax.broadcasted_iota(jnp.int32, (1, tile_m), 1)
            valid = lane < rem                               # lanes holding real x
            std = jnp.sqrt(_batch_var(xf, n) + _EPS)
            acc = acc_ref[...] + jnp.where(valid, std, 0.0)  # mask padded lanes
            s = jnp.sum(acc) * inv_m                         # all lanes done now
            o_ref[...] = jnp.where(valid, x, s).astype(o_ref.dtype)
            # Park the finished scalar in the accumulator for any tail steps.
            acc_ref[...] = jnp.full(acc_ref.shape, s, dtype=acc_ref.dtype)

        tail_start = nm_full + 1
    else:
        @pl.when(i == nm_full)
        def _finalize():
            s = jnp.sum(acc_ref[...]) * inv_m
            acc_ref[...] = jnp.full(acc_ref.shape, s, dtype=acc_ref.dtype)

        tail_start = nm_full

    if n_blocks > tail_start:
        @pl.when(i >= tail_start)
        def _tail_fill():
            o_ref[...] = jnp.broadcast_to(acc_ref[...],
                                          o_ref.shape).astype(o_ref.dtype)


def minibatch_stddev(x, *, tile_m=None):
    """x: (N, C, H, W) -> (N, C+1, H, W), ProGAN minibatch-stddev layer."""
    n, c, h, w = x.shape
    m = c * h * w
    hw = h * w
    out_w = m + hw
    x_flat = x.reshape(n, m)

    vmem_limit = _vmem_budget_bytes()
    if tile_m is None:
        tile_m = _pick_tile_m(n, out_w, x.dtype, vmem_limit)
    assert tile_m % 128 == 0, tile_m

    n_blocks = int(pl.cdiv(out_w, tile_m))   # output lane tiles (grid size)
    n_in_blocks = int(pl.cdiv(m, tile_m))    # tiles containing real x data
    nm_full = m // tile_m                    # tiles fully inside x
    has_boundary = (m % tile_m) != 0         # last x tile is partial

    kernel = functools.partial(
        _mbstd_kernel, n=n, m=m, inv_m=1.0 / m, tile_m=tile_m,
        nm_full=nm_full, has_boundary=has_boundary, n_blocks=n_blocks)

    out_flat = pl.pallas_call(
        kernel,
        out_shape=jax.ShapeDtypeStruct((n, out_w), x.dtype),
        grid_spec=pltpu.PrefetchScalarGridSpec(
            num_scalar_prefetch=0,
            grid=(n_blocks,),
            in_specs=[
                # Clamp so tail steps just re-see the last valid x tile.
                pl.BlockSpec((n, tile_m),
                             lambda i: (0, jnp.minimum(i, n_in_blocks - 1))),
            ],
            out_specs=pl.BlockSpec((n, tile_m), lambda i: (0, i)),
            scratch_shapes=[pltpu.VMEM((1, tile_m), jnp.float32)],
        ),
        compiler_params=pltpu.CompilerParams(
            dimension_semantics=("arbitrary",),   # grid-carried accumulator
            vmem_limit_bytes=vmem_limit,
        ),
    )(x_flat)

    return out_flat.reshape(n, c + 1, h, w)


def _reference(x):
    mu = jnp.mean(x, axis=0, keepdims=True)
    var = jnp.mean((x - mu) ** 2, axis=0)
    std = jnp.sqrt(var + 1e-8)
    s = jnp.mean(std)
    y = jnp.broadcast_to(s, (x.shape[0], 1, x.shape[2], x.shape[3]))
    return jnp.concatenate([x, y], axis=1)


def _check(out, ref, tag):
    assert out.shape == ref.shape, (tag, out.shape, ref.shape)
    assert jnp.allclose(out, ref, rtol=5e-5, atol=1e-2), f"mismatch: {tag}"


if __name__ == "__main__":
    key = jax.random.PRNGKey(0)
    k1, k2, k3, k4 = jax.random.split(key, 4)

    # 1) Small NCHW input consistent with the module (values scaled ~spec).
    x1 = jax.random.uniform(k1, (2, 4, 16, 16), dtype=jnp.float32) * 10000.0
    _check(jax.block_until_ready(minibatch_stddev(x1)), _reference(x1), "auto-1")

    # 2) Odd batch, auto tile (single fused block).
    x2 = jax.random.uniform(k2, (3, 6, 16, 16), dtype=jnp.float32) * 10000.0
    _check(jax.block_until_ready(minibatch_stddev(x2)), _reference(x2), "auto-2")

    # 3) The spec's own shape (M = 75, not a multiple of 128): exercises the
    #    lane-masked boundary path that replaced the whole-array fallback.
    x3 = jax.random.uniform(k3, (10, 3, 5, 5), dtype=jnp.float32) * 10000.0
    _check(jax.block_until_ready(minibatch_stddev(x3)), _reference(x3), "spec-shape")

    # 4) Forced small tile: multiple full tiles + accumulator carry + pure
    #    tail fill (m % tile == 0, extra channel in its own partial block).
    _check(jax.block_until_ready(minibatch_stddev(x2, tile_m=512)),
           _reference(x2), "tiled-aligned")

    # 5) Forced tile with a mixed boundary block (m % tile != 0): full tiles
    #    then a lane-masked x/scalar block covering the whole extra channel.
    x4 = jax.random.uniform(k4, (3, 5, 16, 16), dtype=jnp.float32) * 10000.0
    _check(jax.block_until_ready(minibatch_stddev(x4, tile_m=512)),
           _reference(x4), "tiled-boundary")

    # 6) Forced tiny tile: many tiles + multi-step tail reading the parked
    #    scalar from the carried accumulator across grid steps.
    _check(jax.block_until_ready(minibatch_stddev(x1, tile_m=128)),
           _reference(x1), "tiled-multitail")

    print("KERNEL_OK")
</pallas_src>

<mosaic_0001>
module attributes {stable_mosaic.version = 11 : i64} {
  func.func @_mbstd_kernel(%arg0: i32, %arg1: memref<2x1280xf32, #tpu.memory_space<vmem>>, %arg2: memref<2x1280xf32, #tpu.memory_space<vmem>>, %arg3: memref<1x1280xf32, #tpu.memory_space<vmem>>) attributes {dimension_semantics = [#tpu.dimension_semantics<arbitrary>], iteration_bounds = array<i64: 1>, scalar_prefetch = 0 : i64, scratch_operands = 1 : i64, tpu.core_type = #tpu.core_type<tc>, window_params = [{transform_indices = @transform_0, window_bounds = array<i64: 2, 1280>}, {transform_indices = @transform_1, window_bounds = array<i64: 2, 1280>}]} {
    %c0_i32 = arith.constant 0 : i32
    %0 = arith.cmpi eq, %arg0, %c0_i32 : i32
    %1 = arith.extui %0 : i1 to i32
    %c0_i32_0 = arith.constant 0 : i32
    %2 = arith.cmpi ne, %1, %c0_i32_0 : i32
    scf.if %2 {
      %cst = arith.constant 0.000000e+00 : f32
      %6 = vector.broadcast %cst : f32 to vector<1x1280xf32>
      %c0 = arith.constant 0 : index
      %c0_3 = arith.constant 0 : index
      %7 = vector.load %arg3[%c0, %c0_3] : memref<1x1280xf32, #tpu.memory_space<vmem>>, vector<1x1280xf32>
      tpu.vector_store %arg3[%c0, %c0_3], %6 {strides = array<i32>} : memref<1x1280xf32, #tpu.memory_space<vmem>>, vector<1x1280xf32>,
    } else {
    }
    %c0_i32_1 = arith.constant 0 : i32
    %3 = arith.cmpi eq, %arg0, %c0_i32_1 : i32
    %4 = arith.extui %3 : i1 to i32
    %c0_i32_2 = arith.constant 0 : i32
    %5 = arith.cmpi ne, %4, %c0_i32_2 : i32
    scf.if %5 {
      %c0 = arith.constant 0 : index
      %c0_3 = arith.constant 0 : index
      %6 = vector.load %arg1[%c0, %c0_3] : memref<2x1280xf32, #tpu.memory_space<vmem>>, vector<2x1280xf32>
      %7 = tpu.iota {dimensions = array<i32: 1>} : vector<1x1280xi32>
      %c1024_i32 = arith.constant 1024 : i32
      %8 = vector.broadcast %c1024_i32 : i32 to vector<1x1280xi32>
      %9 = arith.cmpi slt, %7, %8 : vector<1x1280xi32>
      %10 = vector.extract_strided_slice %6 {offsets = [0, 0], sizes = [1, 1280], strides = [1, 1]} : vector<2x1280xf32> to vector<1x1280xf32>
      %11 = vector.extract_strided_slice %6 {offsets = [1, 0], sizes = [1, 1280], strides = [1, 1]} : vector<2x1280xf32> to vector<1x1280xf32>
      %12 = arith.addf %10, %11 : vector<1x1280xf32>
      %cst = arith.constant 5.000000e-01 : f32
      %13 = vector.broadcast %cst : f32 to vector<1x1280xf32>
      %14 = arith.mulf %12, %13 : vector<1x1280xf32>
      %15 = arith.subf %10, %14 : vector<1x1280xf32>
      %16 = arith.mulf %15, %15 : vector<1x1280xf32>
      %17 = arith.subf %11, %14 : vector<1x1280xf32>
      %18 = arith.mulf %17, %17 : vector<1x1280xf32>
      %19 = arith.addf %16, %18 : vector<1x1280xf32>
      %cst_4 = arith.constant 5.000000e-01 : f32
      %20 = vector.broadcast %cst_4 : f32 to vector<1x1280xf32>
      %21 = arith.mulf %19, %20 : vector<1x1280xf32>
      %cst_5 = arith.constant 9.99999993E-9 : f32
      %22 = vector.broadcast %cst_5 : f32 to vector<1x1280xf32>
      %23 = arith.addf %21, %22 : vector<1x1280xf32>
      %24 = math.sqrt %23 : vector<1x1280xf32>
      %c0_6 = arith.constant 0 : index
      %c0_7 = arith.constant 0 : index
      %25 = vector.load %arg3[%c0_6, %c0_7] : memref<1x1280xf32, #tpu.memory_space<vmem>>, vector<1x1280xf32>
      %cst_8 = arith.constant 0.000000e+00 : f32
      %26 = vector.broadcast %cst_8 : f32 to vector<1x1280xf32>
      %27 = arith.select %9, %24, %26 : vector<1x1280xi1>, vector<1x1280xf32>
      %28 = arith.addf %25, %27 : vector<1x1280xf32>
      %29 = vector.shape_cast %28 : vector<1x1280xf32> to vector<1x1x1280xf32>
      %cst_9 = arith.constant dense<0.000000e+00> : vector<1xf32>
      %30 = vector.multi_reduction <add>, %29, %cst_9 [1, 2] : vector<1x1x1280xf32> to vector<1xf32>
      %31 = vector.shape_cast %30 : vector<1xf32> to vector<1x1x1xf32>
      %32 = vector.extract %31[0, 0, 0] : f32 from vector<1x1x1xf32>
      %cst_10 = arith.constant 9.765625E-4 : f32
      %33 = arith.mulf %32, %cst_10 : f32
      %34 = vector.shape_cast %9 : vector<1x1280xi1> to vector<1x1280xi1>
      %35 = vector.broadcast %34 : vector<1x1280xi1> to vector<2x1280xi1>
      %36 = vector.broadcast %33 : f32 to vector<2x1280xf32>
      %37 = arith.select %35, %6, %36 : vector<2x1280xi1>, vector<2x1280xf32>
      %c0_11 = arith.constant 0 : index
      %c0_12 = arith.constant 0 : index
      %38 = vector.load %arg2[%c0_11, %c0_12] : memref<2x1280xf32, #tpu.memory_space<vmem>>, vector<2x1280xf32>
      tpu.vector_store %arg2[%c0_11, %c0_12], %37 {strides = array<i32>} : memref<2x1280xf32, #tpu.memory_space<vmem>>, vector<2x1280xf32>,
      %39 = vector.broadcast %33 : f32 to vector<1x1280xf32>
      %c0_13 = arith.constant 0 : index
      %c0_14 = arith.constant 0 : index
      %40 = vector.load %arg3[%c0_13, %c0_14] : memref<1x1280xf32, #tpu.memory_space<vmem>>, vector<1x1280xf32>
      tpu.vector_store %arg3[%c0_13, %c0_14], %39 {strides = array<i32>} : memref<1x1280xf32, #tpu.memory_space<vmem>>, vector<1x1280xf32>,
    } else {
    }
    return
  }
  func.func @transform_0(%arg0: i32) -> (i32, i32) {
    %c0_i32 = arith.constant 0 : i32
    %0 = arith.minsi %arg0, %c0_i32 : i32
    %c0_i32_0 = arith.constant 0 : i32
    %c0_i32_1 = arith.constant 0 : i32
    return %c0_i32_0, %0 : i32, i32
  }
  func.func @transform_1(%arg0: i32) -> (i32, i32) {
    %c0_i32 = arith.constant 0 : i32
    %c0_i32_0 = arith.constant 0 : i32
    return %c0_i32, %arg0 : i32, i32
  }
}

</mosaic_0001>

<bundles_post_ra>
// kernel: tpu_custom_call.1
= control target key start
LH: loop header
LB: loop body
LE: loop exit
PB: predicated region body
PF: predicated region fallthrough
CT: control target
= control target key end

     0   :  { %6 = vsyncpa [#allocation4], 0  ;;  %s659_s0 = inlined_call_operand.hbm [shape: f32[2,1024], index: 0, kind: input, shape index: {}]   ;;  %s660_s1 = inlined_call_operand.hbm [shape: f32[2,1280], index: 1, kind: output, shape index: {}]  }
   0x1   :  { %7 = vsyncpa [#allocation5], 0 }
   0x2   :  { %12 = vsyncadd [#allocation4], 64  ;;  %s581_s6 = smov [#allocation3]  }
   0x3   :  { %s14_s7 = sshll.u32 %s581_s6, 4  ;;  %s15_s7 = int_to_ptr.vmem [resolvable:$true] %s14_s7 }
   0x4   :  { %s545_s8 = scalar_lea.vmem %s15_s7, 256  ;;  %s549_s9 = scalar_lea.vmem %s15_s7, 320 }
   0x5   :  { %p546_p0 = scmp.ne.s32.totalorder %s15_s7, %s545_s8  ;;  %p550_p1 = scmp.lt.s32.totalorder %s15_s7, %s15_s7 }
   0x6   :  { %p551_p2 = scmp.lt.s32.totalorder %s549_s9, %s545_s8 }
   0x8   :  { %p552_p3 = por %p551_p2, %p550_p1 }
   0xa   :  { %p553_p4 = pnand %p552_p3, %p546_p0 }
   0xc   :  { %556 = shalt.err (!%p553_p4)
}
   0xd   :  { %17 = dma.hbm_to_vmem [thread:$0]  %s659_s0, 256, %s15_s7, [#allocation4]  }
   0xe   :  { %577 = dma.done.wait [#allocation4], 320  }
   0xf   :  { %578 = vsyncadd [#allocation4], 4294966976  ;;  %v26_v0 = vlaneseq  ;;  %v582_v2 = vmov 0.0   ;;  %v606_v3 = vld [vmem:[#allocation3] sm:$0xff]  ;;  %v608_v4 = vld [vmem:[#allocation3 + $0x8] sm:$0xff]  ;;  %vm331_vm5 = vcmask 1040384  }
  0x10   :  { %v519_v5 = vrot.slane %v606_v3, 9  ;;  %v520_v6 = vrot.slane %v608_v4, 9  ;;  %v583_v30 = vmov 1966171168   ;;  %s585_s13 = smov [#allocation6]  }
  0x11   :  { %vm599_vm0 = vcmp.lt.s32.totalorder %v26_v0, 256  ;;  %v618_v29 = vshrl.u32 %v26_v0, 7  ;;  %v216_v31 = vunpack.c.l.s4 %v583_v30  ;;  %s510_s14 = sshll.u32 %s585_s13, 4  ;;  %s511_s14 = int_to_ptr.vmem [resolvable:$true] %s510_s14 }
  0x12   :  { %30 = vst.msk [vmem:[#allocation2 + $0x8] sm:$0x3] %vm599_vm0, %v582_v2  ;;  %v67_v7 = vadd.f32 %v519_v5, %v606_v3  ;;  %v68_v8 = vadd.f32 %v520_v6, %v608_v4  ;;  %s557_s15 = scalar_lea.vmem %s511_s14, 320  ;;  %p562_p6 = scmp.lt.s32.totalorder %s511_s14, %s511_s14 }
  0x13   :  { %v621_v32 = vsub.s32 0, %v618_v29  ;;  %v217_v33 = vunpack.c.0.s8 %v216_v31  ;;  %v147_v36 = vsub.s32 2, %v618_v29  ;;  %v151_v37 = vsub.s32 4, %v618_v29  ;;  %p558_p5 = scmp.ne.s32.totalorder %s511_s14, %s557_s15  ;;  %p563_p7 = scmp.lt.s32.totalorder %s557_s15, %s557_s15 }
  0x14   :  { %v70_v9 = vmul.f32 0.5, %v67_v7  ;;  %v71_v10 = vmul.f32 0.5, %v68_v8  ;;  %v155_v42 = vsub.s32 6, %v618_v29  ;;  %v260_v7 = vcombine.low %v582_v2, %v582_v2 }
  0x15   :  { %v220_v46 = vsub.s32 %v217_v33, %v618_v29  ;;  %p564_p8 = por %p563_p7, %p562_p6 }
  0x16   :  { %v73_v11 = vsub.f32 %v606_v3, %v70_v9  ;;  %v74_v12 = vsub.f32 %v608_v4, %v71_v10  ;;  %v82_v13 = vrot.slane %v70_v9, 7  ;;  %v83_v14 = vrot.slane %v71_v10, 7 }
  0x17   :  { %v287_v10 = vsub.s32 1, %v618_v29  ;;  %p565_p9 = pnand %p564_p8, %p558_p5 }
  0x18   :  { %v88_v15 = vsub.f32 %v606_v3, %v82_v13  ;;  %v89_v16 = vsub.f32 %v608_v4, %v83_v14  ;;  %v76_v17 = vmul.f32 %v73_v11, %v73_v11  ;;  %v77_v18 = vmul.f32 %v74_v12, %v74_v12 }
  0x19   :  { %v295_v11 = vsub.s32 3, %v618_v29  ;;  %v267_v12 = vrot.slane %v260_v7, %v220_v46  ;;  %v303_v13 = vsub.s32 5, %v618_v29 }
  0x1a   :  { %v91_v19 = vmul.f32 %v88_v15, %v88_v15  ;;  %v92_v20 = vmul.f32 %v89_v16, %v89_v16 }
  0x1c   :  { %v522_v21 = vrot.slane %v91_v19, 9  ;;  %v523_v22 = vrot.slane %v92_v20, 9 }
  0x1e   :  { %v106_v23 = vadd.f32 %v522_v21, %v76_v17  ;;  %v107_v24 = vadd.f32 %v523_v22, %v77_v18  ;;  %v274_v18 = vrot.slane %v267_v12, %v220_v46  ;;  %v137_v22 = vld [vmem:[#allocation2 + $0x8] sm:$0x3] }
  0x20   :  { %v109_v25 = vmul.f32 0.5, %v106_v23  ;;  %v110_v26 = vmul.f32 0.5, %v107_v24 }
  0x22   :  { %v112_v27 = vadd.f32 1e-08, %v109_v25  ;;  %v113_v28 = vadd.f32 1e-08, %v110_v26  ;;  %v311_v25 = vsub.s32 7, %v618_v29 }
  0x24   :  { %533 = vrsqrt.f32 %v112_v27  ;;  %vm117_vm1 = vcmp.eq.f32.partialorder %v112_v27, inf  ;;  %v120_v35 = vand.u32 2147483648, %v112_v27  ;;  %vm119_vm2 = vcmp.eq.f32.partialorder %v112_v27, 0.0 }
  0x25   :  { %535 = vrsqrt.f32 %v113_v28  ;;  %vm124_vm3 = vcmp.eq.f32.partialorder %v113_v28, inf  ;;  %v127_v40 = vand.u32 2147483648, %v113_v28  ;;  %vm126_vm4 = vcmp.eq.f32.partialorder %v113_v28, 0.0 }
  0x31   :  { %v534_v34 = vpop.eup %533 }
  0x32   :  { %v536_v38 = vpop.eup %535  ;;  %v116_v39 = vmul.f32 %v534_v34, %v112_v27 }
  0x33   :  { %v123_v41 = vmul.f32 %v536_v38, %v113_v28 }
  0x34   :  { %v118_v43 = vsel %vm117_vm1, %v112_v27, %v116_v39 }
  0x35   :  { %v121_v44 = vsel %vm119_vm2, %v120_v35, %v118_v43  ;;  %v125_v45 = vsel %vm124_vm3, %v113_v28, %v123_v41  ;;  %v278_v28 = vadd.f32 %v274_v18, %v137_v22 }
  0x36   :  { %v128_v47 = vsel %vm126_vm4, %v127_v40, %v125_v45  ;;  %v144_v48 = vrot.slane %v121_v44, %v621_v32  ;;  %v148_v49 = vrot.slane %v121_v44, %v147_v36  ;;  %v152_v50 = vrot.slane %v121_v44, %v151_v37 }
  0x37   :  { %v156_v51 = vrot.slane %v121_v44, %v155_v42  ;;  %v160_v52 = vrot.slane %v128_v47, %v621_v32  ;;  %v164_v53 = vrot.slane %v128_v47, %v147_v36  ;;  %v168_v54 = vrot.slane %v128_v47, %v151_v37 }
  0x38   :  { %v172_v55 = vrot.slane %v128_v47, %v155_v42  ;;  %v211_v56 = vcombine.low %v144_v48, %v148_v49  ;;  %v320_v40 = vrot.slane %v278_v28, %v287_v10  ;;  %v584_v48 = vmov 1983009808  }
  0x39   :  { %v212_v57 = vcombine.low %v152_v50, %v156_v51  ;;  %v213_v58 = vcombine.low %v160_v52, %v164_v53  ;;  %v384_v49 = vunpack.c.l.s4 %v584_v48  ;;  %v399_v52 = vcombine.high %v608_v4, %v608_v4 }
  0x3a   :  { %v214_v59 = vcombine.low %v168_v54, %v172_v55  ;;  %v221_v60 = vrot.slane %v211_v56, %v220_v46 }
  0x3b   :  { %v228_v61 = vrot.slane %v212_v57, %v220_v46  ;;  %v235_v62 = vrot.slane %v213_v58, %v220_v46  ;;  %v385_v50 = vunpack.c.0.s8 %v384_v49 }
  0x3c   :  { %v242_v63 = vrot.slane %v214_v59, %v220_v46 }
  0x3d   :  { %v243_v0 = vcombine.low %v221_v60, %v228_v61  ;;  %v388_v51 = vsub.s32 %v385_v50, %v618_v29 }
  0x3e   :  { %v244_v5 = vcombine.low %v235_v62, %v242_v63 }
  0x3f   :  { %v251_v6 = vrot.slane %v243_v0, %v220_v46  ;;  %v389_v53 = vrot.slane %v606_v3, %v388_v51  ;;  %v406_v55 = vrot.slane %v608_v4, %v388_v51  ;;  %v413_v56 = vrot.slane %v399_v52, %v388_v51 }
  0x40   :  { %v258_v8 = vrot.slane %v244_v5, %v220_v46 }
  0x41   :  { %v397_v57 = vcombine.high %v389_v53, %v389_v53  ;;  %v414_v59 = vcombine.high %v406_v55, %v406_v55  ;;  %v415_v60 = vcombine.high %v413_v56, %v413_v56 }
  0x42   :  { %v259_v9 = vcombine.low %v251_v6, %v258_v8 }
  0x43   :  { %v454_v61 = vcombine.low %v389_v53, %v397_v57  ;;  %v471_v63 = vcombine.low %v406_v55, %v414_v59  ;;  %v472_v0 = vcombine.low %v413_v56, %v415_v60 }
  0x44   :  { %v284_v14 = vrot.slane %v259_v9, %v621_v32  ;;  %v288_v15 = vrot.slane %v259_v9, %v287_v10  ;;  %v292_v16 = vrot.slane %v259_v9, %v147_v36  ;;  %v296_v17 = vrot.slane %v259_v9, %v295_v11 }
  0x45   :  { %v300_v19 = vrot.slane %v259_v9, %v151_v37  ;;  %v304_v24 = vrot.slane %v259_v9, %v303_v13  ;;  %v308_v30 = vrot.slane %v259_v9, %v155_v42  ;;  %v312_v34 = vrot.slane %v259_v9, %v311_v25 }
  0x46   :  { %v332_v20 = vsel %vm331_vm5, %v284_v14, 0.0  ;;  %v333_v2 = vsel %vm331_vm5, %v288_v15, 0.0  ;;  %v335_v21 = vsel %vm331_vm5, %v292_v16, 0.0  ;;  %v337_v26 = vsel %vm331_vm5, %v296_v17, 0.0 }
  0x47   :  { %v334_v23 = vadd.f32 %v333_v2, %v332_v20  ;;  %v339_v31 = vsel %vm331_vm5, %v300_v19, 0.0  ;;  %v341_v35 = vsel %vm331_vm5, %v304_v24, 0.0  ;;  %v316_v37 = vrot.slane %v278_v28, %v621_v32 }
  0x48   :  { %v343_v38 = vsel %vm331_vm5, %v308_v30, 0.0  ;;  %v345_v41 = vsel %vm331_vm5, %v312_v34, 0.0  ;;  %v349_v42 = vsel %vm331_vm5, %v320_v40, 0.0  ;;  %v382_v32 = vcombine.high %v606_v3, %v606_v3 }
  0x49   :  { %v336_v27 = vadd.f32 %v335_v21, %v334_v23  ;;  %v347_v44 = vsel %vm331_vm5, %v316_v37, 0.0  ;;  %v462_v5 = vrot.slane %v454_v61, %v388_v51  ;;  %v479_v29 = vrot.slane %v471_v63, %v388_v51 }
  0x4a   :  { %v396_v54 = vrot.slane %v382_v32, %v388_v51  ;;  %v486_v7 = vrot.slane %v472_v0, %v388_v51 }
  0x4b   :  { %v338_v33 = vadd.f32 %v337_v26, %v336_v27 }
  0x4c   :  { %v398_v58 = vcombine.high %v396_v54, %v396_v54  ;;  %v487_v9 = vcombine.low %v479_v29, %v486_v7 }
  0x4d   :  { %v340_v36 = vadd.f32 %v339_v31, %v338_v33 }
  0x4e   :  { %v455_v62 = vcombine.low %v396_v54, %v398_v58  ;;  %500 = vst [vmem:[#allocation6 + $0x8] sm:$0xff] %v487_v9 }
  0x4f   :  { %v342_v39 = vadd.f32 %v341_v35, %v340_v36 }
  0x50   :  { %v469_v6 = vrot.slane %v455_v62, %v388_v51 }
  0x51   :  { %v344_v43 = vadd.f32 %v343_v38, %v342_v39 }
  0x52   :  { %v470_v8 = vcombine.low %v462_v5, %v469_v6 }
  0x53   :  { %v346_v45 = vadd.f32 %v345_v41, %v344_v43 }
  0x54   :  { %499 = vst [vmem:[#allocation6] sm:$0xff] %v470_v8 }
  0x55   :  { %v348_v46 = vadd.f32 %v347_v44, %v346_v45 }
  0x57   :  { %v350_v47 = vadd.f32 %v349_v42, %v348_v46 }
  0x59   :  { %351 = vadd.xlane.f32.xlu0 %v350_v47 }
  0xe2   :  { %v352_v3 = vpop.xlane.xlu0 %351 }
  0xe3   :  { %v353_v10 = vrot.slane %v352_v3, 4 }
  0xe5   :  { %v354_v4 = vadd.f32 %v353_v10, %v352_v3 }
  0xe7   :  { %v355_v11 = vrot.slane %v354_v4, 2 }
  0xe9   :  { %v356_v12 = vadd.f32 %v355_v11, %v354_v4 }
  0xeb   :  { %v357_v13 = vrot.slane %v356_v12, 1 }
  0xed   :  { %v358_v14 = vadd.f32 %v357_v13, %v356_v12 }
  0xef   :  { %526 = vpush %v358_v14 }
 0x120   :  { %s527_s0 = spop %526 }
 0x121   :  { %s360_s12 = smul.f32 0.0009765625, %s527_s0 }
 0x123   :  { %v381_v15 = vstv %s360_s12 }
 0x124   :  { %v488_v16 = vcombine.low %v381_v15, %v381_v15  ;;  %503 = vst.msk [vmem:[#allocation2 + $0x8] sm:$0x3] %vm599_vm0, %v381_v15 }
 0x126   :  { %525 = vst.sshfl [vmem:[#allocation6 + $0x10] sm:$0x33 pattern:$0x76325410] %v488_v16 }
 0x127   :  { %568 = shalt.err (!%p565_p9)
}
 0x128   :  { %513 = dma.vmem_to_hbm [thread:$0]  %s511_s14, 320, %s660_s1, [#allocation5]  }
 0x129   :  { %579 = dma.done.wait [#allocation5], 320  }
 0x12a   :  { %580 = vsyncadd [#allocation5], 4294966976 }
 0x12b   :  { %517 = vsyncpa [#allocation4], 1 }
 0x12c   :  { %518 = vsyncpa [#allocation5], 1 }

</bundles_post_ra>
